<compile_context>
chip_gen: v7x
topology: tpu7x:2x2x1
jax: 0.10.0
libtpu: 0.0.40
codegen_flags: <defaults>
</compile_context>

<pallas_src>
import functools

import jax
import jax.numpy as jnp
from jax.experimental import pallas as pl
from jax.experimental.pallas import tpu as pltpu


# ----------------------------------------------------------------------------
# Generic tiled matmul + bias kernel (QKV projection and output projection).
# ----------------------------------------------------------------------------
def _matmul_bias_kernel(x_ref, w_ref, b_ref, o_ref, acc_ref):
    @pl.when(pl.program_id(2) == 0)
    def _():
        acc_ref[...] = jnp.zeros_like(acc_ref)

    acc_ref[...] += jnp.dot(x_ref[...], w_ref[...],
                            preferred_element_type=jnp.float32)

    @pl.when(pl.program_id(2) == pl.num_programs(2) - 1)
    def _():
        o_ref[...] = (acc_ref[...] + b_ref[...]).astype(o_ref.dtype)


def _pick_tile(dim, target):
    """Largest 128-multiple tile <= target dividing dim, else the full dim."""
    if dim <= target:
        return dim
    t = (target // 128) * 128
    while t >= 128:
        if dim % t == 0:
            return t
        t -= 128
    # TODO(synk): ragged / non-128-divisible dims fall back to one full block.
    return dim


def _matmul_bias(x, w, b, *, out_dtype, tm=256, tn=256, tk=512):
    M, K = x.shape
    K2, N = w.shape
    assert K == K2
    tm = _pick_tile(M, tm)
    tn = _pick_tile(N, tn)
    tk = _pick_tile(K, tk)
    b2 = b.reshape(1, N).astype(jnp.float32)
    return pl.pallas_call(
        _matmul_bias_kernel,
        out_shape=jax.ShapeDtypeStruct((M, N), out_dtype),
        grid_spec=pltpu.PrefetchScalarGridSpec(
            num_scalar_prefetch=0,
            grid=(M // tm, N // tn, K // tk),
            in_specs=[
                pl.BlockSpec((tm, tk), lambda i, j, k: (i, k)),
                pl.BlockSpec((tk, tn), lambda i, j, k: (k, j)),
                pl.BlockSpec((1, tn), lambda i, j, k: (0, j)),
            ],
            out_specs=pl.BlockSpec((tm, tn), lambda i, j, k: (i, j)),
            scratch_shapes=[pltpu.VMEM((tm, tn), jnp.float32)],
        ),
        compiler_params=pltpu.CompilerParams(
            dimension_semantics=("parallel", "parallel", "arbitrary")),
    )(x, w, b2)


# ----------------------------------------------------------------------------
# Flash attention kernel: all heads per step, online softmax over kv tiles.
# ----------------------------------------------------------------------------
def _flash_attn_kernel(q_ref, k_ref, v_ref, mask_ref, out_ref,
                       m_scr, l_scr, acc_scr, *, num_heads):
    kv = pl.program_id(2)

    @pl.when(kv == 0)
    def _init():
        m_scr[...] = jnp.full_like(m_scr, -1e30)
        l_scr[...] = jnp.zeros_like(l_scr)
        acc_scr[...] = jnp.zeros_like(acc_scr)

    q = q_ref[0]          # (H, tq, D), scale already folded in, kv-resident
    k = k_ref[0]          # (H, tk, D)
    v = v_ref[0]          # (H, tk, D)

    # Scores for all heads at once (batched MXU matmul, f32 accumulation).
    s = jnp.einsum("hqd,hkd->hqk", q, k,
                   preferred_element_type=jnp.float32)        # (H, tq, tk)
    s = s + mask_ref[0].astype(jnp.float32)[None, :, :]

    # Online softmax update (f32 state).
    m_prev = m_scr[...]
    m_new = jnp.maximum(m_prev, jnp.max(s, axis=-1, keepdims=True))
    alpha = jnp.exp(m_prev - m_new)
    p = jnp.exp(s - m_new)
    l_scr[...] = alpha * l_scr[...] + jnp.sum(p, axis=-1, keepdims=True)
    acc_scr[...] = alpha * acc_scr[...] + jnp.einsum(
        "hqk,hkd->hqd", p.astype(v.dtype), v,
        preferred_element_type=jnp.float32)
    m_scr[...] = m_new

    # Last kv tile: normalize and emit a lane-dense (tq, H*D) context block.
    @pl.when(kv == pl.num_programs(2) - 1)
    def _flush():
        ctx = acc_scr[...] * pl.reciprocal(l_scr[...], approx=True)  # (H,tq,D)
        out_ref[0] = jnp.concatenate(
            [ctx[h] for h in range(num_heads)], axis=-1).astype(out_ref.dtype)


def _flash_attention(q, k, v, mask, *, out_dtype, q_tile=None, kv_tile=None,
                     vmem_limit_bytes=None):
    """q/k/v: (B, H, S, D); mask: additive (B, S, S); returns (B, S, H*D)."""
    B, H, S, D = q.shape
    E = H * D
    tq = q_tile if q_tile is not None else _pick_tile(S, 256)
    tk = kv_tile if kv_tile is not None else _pick_tile(S, 256)
    assert S % tq == 0 and S % tk == 0

    if vmem_limit_bytes is None:
        itm = q.dtype.itemsize
        mitm = mask.dtype.itemsize
        oitm = jnp.dtype(out_dtype).itemsize
        est = 2 * (H * tq * D * itm          # q (double buffered, kv-resident)
                   + 2 * H * tk * D * itm    # k + v
                   + tq * tk * mitm          # mask
                   + tq * E * oitm)          # output block
        est += 2 * (H * tq * 128 * 4) + H * tq * D * 4   # m, l (lane-padded), acc
        vmem_limit_bytes = min(max(int(est * 1.5) + (8 << 20), 32 << 20),
                               56 << 20)     # v7x (64 MiB) safe ceiling

    kernel = functools.partial(_flash_attn_kernel, num_heads=H)
    return pl.pallas_call(
        kernel,
        out_shape=jax.ShapeDtypeStruct((B, S, E), out_dtype),
        grid_spec=pltpu.PrefetchScalarGridSpec(
            num_scalar_prefetch=0,
            grid=(B, S // tq, S // tk),
            in_specs=[
                pl.BlockSpec((1, H, tq, D), lambda b, qi, ki: (b, 0, qi, 0)),
                pl.BlockSpec((1, H, tk, D), lambda b, qi, ki: (b, 0, ki, 0)),
                pl.BlockSpec((1, H, tk, D), lambda b, qi, ki: (b, 0, ki, 0)),
                pl.BlockSpec((1, tq, tk), lambda b, qi, ki: (b, qi, ki)),
            ],
            out_specs=pl.BlockSpec((1, tq, E), lambda b, qi, ki: (b, qi, 0)),
            scratch_shapes=[
                pltpu.VMEM((H, tq, 1), jnp.float32),   # running row max
                pltpu.VMEM((H, tq, 1), jnp.float32),   # running denominator
                pltpu.VMEM((H, tq, D), jnp.float32),   # un-normalized context
            ],
        ),
        compiler_params=pltpu.CompilerParams(
            dimension_semantics=("parallel", "parallel", "arbitrary"),
            vmem_limit_bytes=vmem_limit_bytes,
        ),
    )(q, k, v, mask)


# ----------------------------------------------------------------------------
# QKVBlock forward (rope=None, eval mode).
# ----------------------------------------------------------------------------
def qkv_block_forward(x, params, mask=None, *, num_heads, q_tile=None,
                      kv_tile=None, mxu_dtype=jnp.bfloat16,
                      vmem_limit_bytes=None):
    """x: (B, S, E); params in torch nn.Linear layout (W: (out,in), b: (out,));
    mask: optional additive (B, 1, S, S)."""
    B, S, E = x.shape
    assert E % num_heads == 0
    D = E // num_heads
    scale = float(D) ** -0.5

    if mask is None:
        mask = jnp.zeros((B, 1, S, S), jnp.float32)

    # Fused QKV projection (hoisted out of the flash kv loop).
    wqkv = jnp.concatenate([params["wq"], params["wk"], params["wv"]], axis=0)
    bqkv = jnp.concatenate([params["bq"], params["bk"], params["bv"]])
    qkv = _matmul_bias(x.reshape(B * S, E).astype(mxu_dtype),
                       wqkv.T.astype(mxu_dtype), bqkv,
                       out_dtype=jnp.float32)                   # (B*S, 3E) f32

    def to_heads(y):
        return y.reshape(B, S, num_heads, D).transpose(0, 2, 1, 3)  # (B,H,S,D)

    q = to_heads(qkv[:, :E]) * scale          # fold scale into q
    k = to_heads(qkv[:, E:2 * E])
    v = to_heads(qkv[:, 2 * E:])

    mask_dtype = jnp.bfloat16 if mxu_dtype == jnp.bfloat16 else jnp.float32
    mask3 = jnp.broadcast_to(mask, (B, 1, S, S)).reshape(B, S, S).astype(mask_dtype)

    ctx = _flash_attention(q.astype(mxu_dtype), k.astype(mxu_dtype),
                           v.astype(mxu_dtype), mask3, out_dtype=mxu_dtype,
                           q_tile=q_tile, kv_tile=kv_tile,
                           vmem_limit_bytes=vmem_limit_bytes)   # (B, S, E)

    # Output projection (hoisted out of the attention kernel).
    out = _matmul_bias(ctx.reshape(B * S, E),
                       params["wo"].T.astype(mxu_dtype), params["bo"],
                       out_dtype=x.dtype)
    return out.reshape(B, S, E)


# ----------------------------------------------------------------------------
# Pure-JAX reference (mirrors the PyTorch forward, rope=None, eval mode).
# ----------------------------------------------------------------------------
def _reference_forward(x, params, mask, *, num_heads, cast_dtype=None):
    B, S, E = x.shape
    D = E // num_heads
    scale = float(D) ** -0.5
    cast = (lambda a: a) if cast_dtype is None else (lambda a: a.astype(cast_dtype))

    def proj(w, b):
        y = jnp.dot(cast(x), cast(w.T), preferred_element_type=jnp.float32) + b
        return y.reshape(B, S, num_heads, D).transpose(0, 2, 1, 3)

    q = proj(params["wq"], params["bq"])
    k = proj(params["wk"], params["bk"])
    v = proj(params["wv"], params["bv"])
    s = jnp.einsum("bhqd,bhkd->bhqk", cast(q * scale), cast(k),
                   preferred_element_type=jnp.float32) + mask
    p = jax.nn.softmax(s, axis=-1)
    ctx = jnp.einsum("bhqk,bhkd->bhqd", cast(p), cast(v),
                     preferred_element_type=jnp.float32)
    ctx = ctx.transpose(0, 2, 1, 3).reshape(B, S, E)
    return jnp.dot(cast(ctx), cast(params["wo"].T),
                   preferred_element_type=jnp.float32) + params["bo"]


if __name__ == "__main__":
    B, S, E, H = 2, 8, 32, 4

    key = jax.random.PRNGKey(0)
    keys = jax.random.split(key, 10)

    std = 1.0 / (E ** 0.5)
    params = {
        "wq": jax.random.normal(keys[0], (E, E), jnp.float32) * std,
        "bq": jax.random.normal(keys[1], (E,), jnp.float32) * std,
        "wk": jax.random.normal(keys[2], (E, E), jnp.float32) * std,
        "bk": jax.random.normal(keys[3], (E,), jnp.float32) * std,
        "wv": jax.random.normal(keys[4], (E, E), jnp.float32) * std,
        "bv": jax.random.normal(keys[5], (E,), jnp.float32) * std,
        "wo": jax.random.normal(keys[6], (E, E), jnp.float32) * std,
        "bo": jax.random.normal(keys[7], (E,), jnp.float32) * std,
    }

    x = jax.random.normal(keys[8], (B, S, E), jnp.float32)

    # Causal additive mask: 0 where allowed, -1e9 where masked.
    causal = jnp.tril(jnp.ones((S, S), jnp.float32))
    mask = jnp.where(causal > 0, 0.0, -1e9)[None, None, :, :]
    mask = jnp.broadcast_to(mask, (B, 1, S, S))

    # 1) f32 MXU path — tight check of the flash / online-softmax algorithm.
    out_f32 = jax.block_until_ready(
        qkv_block_forward(x, params, mask, num_heads=H, mxu_dtype=jnp.float32))
    ref_f32 = _reference_forward(x, params, mask, num_heads=H)
    assert out_f32.shape == (B, S, E)
    err32 = float(jnp.max(jnp.abs(out_f32 - ref_f32)))
    assert err32 < 2e-2, f"f32-path mismatch vs reference: max abs err {err32}"

    # 2) default bf16 MXU path — compare against a reference with matching casts.
    out_bf16 = jax.block_until_ready(
        qkv_block_forward(x, params, mask, num_heads=H))
    ref_bf16 = _reference_forward(x, params, mask, num_heads=H,
                                  cast_dtype=jnp.bfloat16)
    errbf = float(jnp.max(jnp.abs(out_bf16 - ref_bf16)))
    assert errbf < 5e-2, f"bf16-path mismatch vs cast reference: max abs err {errbf}"

    print("KERNEL_OK")
</pallas_src>

<mosaic_0001>
module attributes {stable_mosaic.version = 11 : i64} {
  func.func @_matmul_bias_kernel(%arg0: i32, %arg1: i32, %arg2: i32, %arg3: memref<16x32xf32, #tpu.memory_space<vmem>>, %arg4: memref<32x96xf32, #tpu.memory_space<vmem>>, %arg5: memref<1x96xf32, #tpu.memory_space<vmem>>, %arg6: memref<16x96xf32, #tpu.memory_space<vmem>>, %arg7: memref<16x96xf32, #tpu.memory_space<vmem>>) attributes {dimension_semantics = [#tpu.dimension_semantics<parallel>, #tpu.dimension_semantics<parallel>, #tpu.dimension_semantics<arbitrary>], iteration_bounds = array<i64: 1, 1, 1>, scalar_prefetch = 0 : i64, scratch_operands = 1 : i64, tpu.core_type = #tpu.core_type<tc>, window_params = [{transform_indices = @transform_0, window_bounds = array<i64: 16, 32>}, {transform_indices = @transform_1, window_bounds = array<i64: 32, 96>}, {transform_indices = @transform_2, window_bounds = array<i64: 1, 96>}, {transform_indices = @transform_3, window_bounds = array<i64: 16, 96>}]} {
    %c0_i32 = arith.constant 0 : i32
    %0 = arith.cmpi eq, %arg2, %c0_i32 : i32
    %1 = arith.extui %0 : i1 to i32
    %c0_i32_0 = arith.constant 0 : i32
    %2 = arith.cmpi ne, %1, %c0_i32_0 : i32
    scf.if %2 {
      %cst_10 = arith.constant 0.000000e+00 : f32
      %12 = vector.broadcast %cst_10 : f32 to vector<16x96xf32>
      %c0_11 = arith.constant 0 : index
      %c0_12 = arith.constant 0 : index
      %13 = vector.load %arg7[%c0_11, %c0_12] : memref<16x96xf32, #tpu.memory_space<vmem>>, vector<16x96xf32>
      tpu.vector_store %arg7[%c0_11, %c0_12], %12 {strides = array<i32>} : memref<16x96xf32, #tpu.memory_space<vmem>>, vector<16x96xf32>,
    } else {
    }
    %c0 = arith.constant 0 : index
    %c0_1 = arith.constant 0 : index
    %3 = vector.load %arg7[%c0, %c0_1] : memref<16x96xf32, #tpu.memory_space<vmem>>, vector<16x96xf32>
    %c0_2 = arith.constant 0 : index
    %c0_3 = arith.constant 0 : index
    %4 = vector.load %arg3[%c0_2, %c0_3] : memref<16x32xf32, #tpu.memory_space<vmem>>, vector<16x32xf32>
    %c0_4 = arith.constant 0 : index
    %c0_5 = arith.constant 0 : index
    %5 = vector.load %arg4[%c0_4, %c0_5] : memref<32x96xf32, #tpu.memory_space<vmem>>, vector<32x96xf32>
    %cst = arith.constant dense<0.000000e+00> : vector<16x96xf32>
    %6 = tpu.matmul %4, %5, %cst {dimension_numbers = #tpu.dot_dimension_numbers<[1], [0], [0], [1], [0, 0, 1, 1], [], []>} : vector<16x32xf32>, vector<32x96xf32>, vector<16x96xf32> -> vector<16x96xf32>
    %7 = arith.addf %3, %6 : vector<16x96xf32>
    %c0_6 = arith.constant 0 : index
    %c0_7 = arith.constant 0 : index
    %8 = vector.load %arg7[%c0_6, %c0_7] : memref<16x96xf32, #tpu.memory_space<vmem>>, vector<16x96xf32>
    tpu.vector_store %arg7[%c0_6, %c0_7], %7 {strides = array<i32>} : memref<16x96xf32, #tpu.memory_space<vmem>>, vector<16x96xf32>,
    %c0_i32_8 = arith.constant 0 : i32
    %9 = arith.cmpi eq, %arg2, %c0_i32_8 : i32
    %10 = arith.extui %9 : i1 to i32
    %c0_i32_9 = arith.constant 0 : i32
    %11 = arith.cmpi ne, %10, %c0_i32_9 : i32
    scf.if %11 {
      %c0_10 = arith.constant 0 : index
      %c0_11 = arith.constant 0 : index
      %12 = vector.load %arg7[%c0_10, %c0_11] : memref<16x96xf32, #tpu.memory_space<vmem>>, vector<16x96xf32>
      %c0_12 = arith.constant 0 : index
      %c0_13 = arith.constant 0 : index
      %13 = vector.load %arg5[%c0_12, %c0_13] : memref<1x96xf32, #tpu.memory_space<vmem>>, vector<1x96xf32>
      %14 = vector.broadcast %13 : vector<1x96xf32> to vector<16x96xf32>
      %15 = arith.addf %12, %14 : vector<16x96xf32>
      %c0_14 = arith.constant 0 : index
      %c0_15 = arith.constant 0 : index
      %16 = vector.load %arg6[%c0_14, %c0_15] : memref<16x96xf32, #tpu.memory_space<vmem>>, vector<16x96xf32>
      tpu.vector_store %arg6[%c0_14, %c0_15], %15 {strides = array<i32>} : memref<16x96xf32, #tpu.memory_space<vmem>>, vector<16x96xf32>,
    } else {
    }
    return
  }
  func.func @transform_0(%arg0: i32, %arg1: i32, %arg2: i32) -> (i32, i32) {
    %c0_i32 = arith.constant 0 : i32
    return %arg0, %arg2 : i32, i32
  }
  func.func @transform_1(%arg0: i32, %arg1: i32, %arg2: i32) -> (i32, i32) {
    %c0_i32 = arith.constant 0 : i32
    return %arg2, %arg1 : i32, i32
  }
  func.func @transform_2(%arg0: i32, %arg1: i32, %arg2: i32) -> (i32, i32) {
    %c0_i32 = arith.constant 0 : i32
    %c0_i32_0 = arith.constant 0 : i32
    return %c0_i32, %arg1 : i32, i32
  }
  func.func @transform_3(%arg0: i32, %arg1: i32, %arg2: i32) -> (i32, i32) {
    %c0_i32 = arith.constant 0 : i32
    return %arg0, %arg1 : i32, i32
  }
}

</mosaic_0001>

<bundles_post_ra>
// kernel: tpu_custom_call.1
= control target key start
LH: loop header
LB: loop body
LE: loop exit
PB: predicated region body
PF: predicated region fallthrough
CT: control target
= control target key end

     0   :  { %8 = vsyncpa [#allocation4], 0  ;;  %s365_s0 = inlined_call_operand.hbm [shape: f32[16,32], index: 0, kind: input, shape index: {}]   ;;  %s366_s1 = inlined_call_operand.hbm [shape: f32[32,96], index: 1, kind: input, shape index: {}]   ;;  %s367_s2 = inlined_call_operand.vmem [shape: f32[1,96], index: 2, kind: input, shape index: {}]   ;;  %s368_s3 = inlined_call_operand.hbm [shape: f32[16,96], index: 3, kind: output, shape index: {}]  }
   0x1   :  { %9 = vsyncpa [#allocation7], 0 }
   0x2   :  { %10 = vsyncpa [#allocation5], 0  ;;  %s285_s12 = smov [#allocation3]   ;;  %s213_s16 = scalar_lea.hbm %s365_s0, 256 }
   0x3   :  { %s16_s13 = sshll.u32 %s285_s12, 4  ;;  %p214_p0 = scmp.ne.s32.totalorder %s365_s0, %s213_s16  ;;  %s17_s13 = int_to_ptr.vmem [resolvable:$true] %s16_s13 }
   0x4   :  { %p217_p1 = scmp.lt.u32.totalorder %s213_s16, %s365_s0 }
   0x6   :  { %p219_p2 = pnand %p217_p1, %p214_p0 }
   0x8   :  { %222 = shalt.err (!%p219_p2)
}
   0x9   :  { %s223_s21 = scalar_lea.vmem %s17_s13, 256  ;;  %p228_p4 = scmp.lt.s32.totalorder %s17_s13, %s17_s13 }
   0xa   :  { %p224_p3 = scmp.ne.s32.totalorder %s17_s13, %s223_s21  ;;  %p229_p5 = scmp.lt.s32.totalorder %s223_s21, %s223_s21 }
   0xc   :  { %p230_p6 = por %p229_p5, %p228_p4 }
   0xe   :  { %p231_p7 = pnand %p230_p6, %p224_p3 }
  0x10   :  { %234 = shalt.err (!%p231_p7)
}
  0x11   :  { %s286_s22 = smov 128   ;;  %s287_s23 = smov 8  }
  0x12   :  { %22 = dma.hbm_to_vmem [thread:$0]  %s365_s0, 256, %s17_s13, [#allocation4], %s286_s22, %s286_s22, %s287_s23  }
  0x13   :  { %s288_s26 = smov [#allocation6]   ;;  %s235_s30 = scalar_lea.hbm %s366_s1, 512 }
  0x14   :  { %s28_s27 = sshll.u32 %s288_s26, 4  ;;  %p236_p8 = scmp.ne.s32.totalorder %s366_s1, %s235_s30  ;;  %s29_s27 = int_to_ptr.vmem [resolvable:$true] %s28_s27 }
  0x15   :  { %p239_p9 = scmp.lt.u32.totalorder %s235_s30, %s366_s1 }
  0x17   :  { %p241_p10 = pnand %p239_p9, %p236_p8 }
  0x19   :  { %244 = shalt.err (!%p241_p10)
}
  0x1a   :  { %s245_s8 = scalar_lea.vmem %s29_s27, 512  ;;  %p250_p12 = scmp.lt.s32.totalorder %s29_s27, %s29_s27 }
  0x1b   :  { %p246_p11 = scmp.ne.s32.totalorder %s29_s27, %s245_s8  ;;  %p251_p13 = scmp.lt.s32.totalorder %s245_s8, %s245_s8 }
  0x1d   :  { %p252_p0 = por %p251_p13, %p250_p12 }
  0x1f   :  { %p253_p1 = pnand %p252_p0, %p246_p11 }
  0x21   :  { %256 = shalt.err (!%p253_p1)
}
  0x22   :  { %34 = dma.hbm_to_vmem [thread:$0]  %s366_s1, 512, %s29_s27, [#allocation7], %s286_s22, %s286_s22, %s287_s23  }
  0x23   :  { %279 = dma.done.wait [#allocation4], 256  }
  0x24   :  { %280 = vsyncadd [#allocation4], 4294967040 }
  0x25   :  { %281 = dma.done.wait [#allocation7], 512  }
  0x26   :  { %282 = vsyncadd [#allocation7], 4294966784  ;;  %vm47_vm0 = vcmask 785408   ;;  %v289_v0 = vmov 0.0   ;;  %vm58_vm1 = vcmask 261120   ;;  %v54_v1 = vld [vmem:[#allocation6] sm:$0xff] }
  0x27   :  { %49 = vst.msk [vmem:[#allocation2 + $0x8] sm:$0xff] %vm47_vm0, %v289_v0  ;;  %48 = vst.msk [vmem:[#allocation2] sm:$0xff] %vm47_vm0, %v289_v0  ;;  %v55_v2 = vld [vmem:[#allocation6 + $0x8] sm:$0xff]  ;;  %v56_v3 = vld [vmem:[#allocation6 + $0x10] sm:$0xff]  ;;  %s290_s11 = smov [#allocation8]  }
  0x28   :  { %v199_v4 = vpack.c.bf16 %v55_v2, %v54_v1  ;;  %v57_v5 = vld [vmem:[#allocation6 + $0x18] sm:$0xff]  ;;  %v52_v6 = vld [vmem:[#allocation3] sm:$0xff]  ;;  %v181_v15 = vld [vmem:[%s367_s2] ss:$0 sm:$0xff]  ;;  %s166_s12 = sshll.u32 %s290_s11, 4  ;;  %s167_s12 = int_to_ptr.vmem [resolvable:$true] %s166_s12 }
  0x29   :  { %v203_v7 = vpack.c.bf16 %v57_v5, %v56_v3  ;;  %196 = vmatprep.mubr.msk.f32.mxu0 %vm58_vm1, %v52_v6  ;;  %v53_v8 = vld [vmem:[#allocation3 + $0x8] sm:$0xff]  ;;  %s257_s13 = scalar_lea.vmem %s167_s12, 256  ;;  %p262_p3 = scmp.lt.s32.totalorder %s167_s12, %s167_s12 }
  0x2a   :  { %200 = vmatprep.subr.bf16.mxu0 %v199_v4  ;;  %p258_p2 = scmp.ne.s32.totalorder %s167_s12, %s257_s13  ;;  %p263_p4 = scmp.lt.s32.totalorder %s257_s13, %s257_s13 }
  0x2b   :  { %202 = vmatpush3.bf16.msra.mxu0 %v199_v4 }
  0x2c   :  { %204 = vmatprep.subr.bf16.mxu0 %v203_v7  ;;  %p264_p5 = por %p263_p4, %p262_p3 }
  0x2e   :  { %v51_v9 = vld [vmem:[#allocation2 + $0x8] sm:$0xff]  ;;  %v50_v10 = vld [vmem:[#allocation2] sm:$0xff]  ;;  %p265_p6 = pnand %p264_p5, %p258_p2 }
  0x2f   :  { %206 = vmatpush3.bf16.msra.mxu0 %v203_v7 }
  0x32   :  { %197 = vmatmul.mubr.msk.f32.vlgmr.msra.gmra.mrb[0].mxu0 %vm58_vm1, %v53_v8 }
 0x105   :  { %v198_v11 = vpop.f32.mrb[0].mxu0 }
 0x106   :  { %v141_v12 = vadd.f32 %v198_v11, %v51_v9  ;;  %v131_v13 = vpop.f32.mrb[1].mxu0 }
 0x107   :  { %v140_v14 = vadd.f32 %v131_v13, %v50_v10 }
 0x108   :  { %144 = vst.msk [vmem:[#allocation2 + $0x8] sm:$0xff] %vm47_vm0, %v141_v12 }
 0x109   :  { %143 = vst.msk [vmem:[#allocation2] sm:$0xff] %vm47_vm0, %v140_v14 }
 0x10f   :  { %v149_v16 = vld [vmem:[#allocation2 + $0x8] sm:$0xff] }
 0x110   :  { %v148_v17 = vld [vmem:[#allocation2] sm:$0xff]  ;;  %v158_v18 = vadd.f32 %v181_v15, %v149_v16 }
 0x111   :  { %v157_v19 = vadd.f32 %v181_v15, %v148_v17 }
 0x112   :  { %160 = vst.msk [vmem:[#allocation8 + $0x8] sm:$0xff] %vm47_vm0, %v158_v18 }
 0x113   :  { %159 = vst.msk [vmem:[#allocation8] sm:$0xff] %vm47_vm0, %v157_v19 }
 0x114   :  { %268 = shalt.err (!%p265_p6)
}
 0x115   :  { %s269_s15 = scalar_lea.hbm %s368_s3, 256 }
 0x116   :  { %p270_p7 = scmp.ne.s32.totalorder %s368_s3, %s269_s15  ;;  %p273_p8 = scmp.lt.u32.totalorder %s269_s15, %s368_s3 }
 0x118   :  { %p275_p9 = pnand %p273_p8, %p270_p7 }
 0x11a   :  { %278 = shalt.err (!%p275_p9)
}
 0x11b   :  { %172 = dma.vmem_to_hbm [thread:$0]  %s167_s12, 256, %s368_s3, [#allocation5], %s286_s22, %s286_s22, %s287_s23  }
 0x11c   :  { %283 = dma.done.wait [#allocation5], 256  }
 0x11d   :  { %284 = vsyncadd [#allocation5], 4294967040 }
 0x11e   :  { %176 = vsyncpa [#allocation4], 1 }
 0x11f   :  { %177 = vsyncpa [#allocation7], 1 }
 0x120   :  { %178 = vsyncpa [#allocation5], 1 }

</bundles_post_ra>
